<compile_context>
chip_gen: v7x
topology: tpu7x:2x2x1
jax: 0.10.0
libtpu: 0.0.40
codegen_flags: <defaults>
</compile_context>

<pallas_src>
import functools

import jax
import jax.numpy as jnp
from jax.experimental import pallas as pl
from jax.experimental.pallas import tpu as pltpu


def _round_up(x, m):
    return ((x + m - 1) // m) * m


def _graph_embed_kernel(n, tm, needs_mask, hv_ref, wg_ref, bg_ref, wt_ref,
                        bt_ref, out_ref, s_acc, g_acc):
    """Grid axis 0 tiles the node (row) dimension of hv.

    Accumulates  s = sum_n gate_n * hv_n   ([1, H])   and   g = sum_n gate_n
    across tiles, then applies the node_to_graph projection once at the end:
        out = s @ Wt + g * bt
    """
    i = pl.program_id(0)

    @pl.when(i == 0)
    def _init():
        s_acc[...] = jnp.zeros_like(s_acc)
        g_acc[...] = jnp.zeros_like(g_acc)

    hv = hv_ref[...]                                         # [TM, H] f32

    # Gate logit on VPU/XLU (broadcast multiply + lane reduce); bg is a scalar
    # read from SMEM.
    logit = jnp.sum(hv * wg_ref[...], axis=-1, keepdims=True) + bg_ref[0, 0]
    gate = jax.nn.sigmoid(logit)                             # [TM, 1]

    if needs_mask:
        # Zero the gates of zero-padded rows beyond the true node count n.
        row = i * tm + jax.lax.broadcasted_iota(jnp.int32, (tm, 1), 0)
        gate = jnp.where(row < n, gate, 0.0)

    # Per-tile partial sums (VPU mul + sublane reduce; the hv HBM stream and
    # the per-grid-step overhead dominate, so these ride in idle slots).
    s_acc[...] += jnp.sum(gate * hv, axis=0, keepdims=True)  # [1, H]
    g_acc[...] += jnp.sum(gate, keepdims=True)               # [1, 1]

    @pl.when(i == pl.num_programs(0) - 1)
    def _finalize():
        # Apply the node_to_graph Linear exactly once: out = s @ Wt + g * bt.
        proj = jnp.dot(s_acc[...], wt_ref[...],
                       preferred_element_type=jnp.float32)   # [1, 2H]  (MXU)
        out_ref[...] = (proj + g_acc[...] * bt_ref[...]).astype(out_ref.dtype)


def graph_embed(hv, w_gate, b_gate, w_graph, b_graph, *, tm=None):
    """DGMG GraphEmbed forward.

    hv:      [N, H]  node features (g.ndata['hv'])
    w_gate:  [H, 1]  node_gating Linear weight (stored [in, out])
    b_gate:  [1, 1]  node_gating Linear bias
    w_graph: [H, 2H] node_to_graph Linear weight (stored [in, out])
    b_graph: [1, 2H] node_to_graph Linear bias
    returns: [1, 2H] float32
    """
    n, h = hv.shape
    gh = w_graph.shape[1]

    # PyTorch branch: empty graph -> zeros(1, graph_hidden_size). N is a
    # trace-time constant here, so resolve statically.
    if n == 0:
        return jnp.zeros((1, gh), dtype=jnp.float32)

    hv = hv.astype(jnp.float32)
    wg_row = jnp.reshape(w_gate.astype(jnp.float32), (1, h))   # gate weight row
    bg = jnp.reshape(b_gate.astype(jnp.float32), (1, 1))
    wt = w_graph.astype(jnp.float32)
    bt = jnp.reshape(b_graph.astype(jnp.float32), (1, gh))

    # Row-tile size: ~4 MiB per hv buffer => the double-buffered stream stays
    # far below the scoped VMEM limit on every generation (incl. v7x).
    if tm is None:
        budget_rows = max(8, (4 * 1024 * 1024) // (h * 4))
        tm = min(_round_up(n, 8), _round_up(budget_rows, 8))
    tm = max(8, _round_up(int(tm), 8))

    n_pad = _round_up(n, tm)
    needs_mask = n_pad != n
    if needs_mask:
        hv = jnp.pad(hv, ((0, n_pad - n), (0, 0)))

    grid = (n_pad // tm,)
    kernel = functools.partial(_graph_embed_kernel, n, tm, needs_mask)

    return pl.pallas_call(
        kernel,
        out_shape=jax.ShapeDtypeStruct((1, gh), jnp.float32),
        grid=grid,
        in_specs=[
            pl.BlockSpec((tm, h), lambda i: (i, 0)),    # hv: streamed row tiles
            pl.BlockSpec((1, h), lambda i: (0, 0)),     # wg row: resident
            pl.BlockSpec(memory_space=pltpu.MemorySpace.SMEM),  # bg scalar
            pl.BlockSpec((h, gh), lambda i: (0, 0)),    # Wt: resident
            pl.BlockSpec((1, gh), lambda i: (0, 0)),    # bt: resident
        ],
        out_specs=pl.BlockSpec((1, gh), lambda i: (0, 0)),
        scratch_shapes=[
            pltpu.VMEM((1, h), jnp.float32),    # s accumulator
            pltpu.VMEM((1, 1), jnp.float32),    # sum(gate) accumulator
        ],
        compiler_params=pltpu.CompilerParams(
            dimension_semantics=("arbitrary",)),   # reduction over row tiles
    )(hv, wg_row, bg, wt, bt)


def _reference(hv, w_gate, b_gate, w_graph, b_graph):
    gate = jax.nn.sigmoid(hv @ w_gate + b_gate)
    proj = hv @ w_graph + b_graph
    return jnp.sum(gate * proj, axis=0, keepdims=True)


if __name__ == "__main__":
    node_hidden_size = 32
    graph_hidden_size = 2 * node_hidden_size
    num_nodes = 16

    key = jax.random.PRNGKey(0)
    k_hv, k_wg, k_bg, k_wt, k_bt = jax.random.split(key, 5)

    hv = jax.random.normal(k_hv, (num_nodes, node_hidden_size), dtype=jnp.float32)
    # Linear parameters stored as [in, out].
    w_gate = jax.random.normal(k_wg, (node_hidden_size, 1), dtype=jnp.float32) * 0.1
    b_gate = jax.random.normal(k_bg, (1, 1), dtype=jnp.float32) * 0.1
    w_graph = jax.random.normal(k_wt, (node_hidden_size, graph_hidden_size),
                                dtype=jnp.float32) * 0.1
    b_graph = jax.random.normal(k_bt, (1, graph_hidden_size), dtype=jnp.float32) * 0.1

    # Small demo graph (single tile, no masking path).
    out = jax.block_until_ready(graph_embed(hv, w_gate, b_gate, w_graph, b_graph))
    ref = _reference(hv, w_gate, b_gate, w_graph, b_graph)
    assert out.shape == (1, graph_hidden_size)
    assert jnp.allclose(out, ref, atol=1e-4, rtol=1e-4)

    # Larger graph exercising the multi-tile grid + row-masking path.
    hv_big = jax.random.normal(k_hv, (1000, node_hidden_size), dtype=jnp.float32)
    out_big = jax.block_until_ready(
        graph_embed(hv_big, w_gate, b_gate, w_graph, b_graph, tm=256))
    ref_big = _reference(hv_big, w_gate, b_gate, w_graph, b_graph)
    assert jnp.allclose(out_big, ref_big, atol=1e-3, rtol=1e-3)

    # Empty-graph branch.
    out_empty = graph_embed(jnp.zeros((0, node_hidden_size), jnp.float32),
                            w_gate, b_gate, w_graph, b_graph)
    assert out_empty.shape == (1, graph_hidden_size)
    assert bool(jnp.all(out_empty == 0))

    print("KERNEL_OK")
</pallas_src>

<mosaic_0001>
module attributes {stable_mosaic.version = 11 : i64} {
  func.func @_graph_embed_kernel(%arg0: i32, %arg1: memref<16x32xf32, #tpu.memory_space<vmem>>, %arg2: memref<1x32xf32, #tpu.memory_space<vmem>>, %arg3: memref<1x1xf32, #tpu.memory_space<smem>>, %arg4: memref<32x64xf32, #tpu.memory_space<vmem>>, %arg5: memref<1x64xf32, #tpu.memory_space<vmem>>, %arg6: memref<1x64xf32, #tpu.memory_space<vmem>>, %arg7: memref<1x32xf32, #tpu.memory_space<vmem>>, %arg8: memref<1x1xf32, #tpu.memory_space<vmem>>) attributes {dimension_semantics = [#tpu.dimension_semantics<arbitrary>], iteration_bounds = array<i64: 1>, scalar_prefetch = 0 : i64, scratch_operands = 2 : i64, tpu.core_type = #tpu.core_type<tc>, window_params = [{transform_indices = @transform_0, window_bounds = array<i64: 16, 32>}, {pipeline_mode = #tpu.pipeline_mode<synchronous>, transform_indices = @transform_1, window_bounds = array<i64: 1, 32>}, {transform_indices = @transform_2, window_bounds = array<i64: 1, 1>}, {pipeline_mode = #tpu.pipeline_mode<synchronous>, transform_indices = @transform_3, window_bounds = array<i64: 32, 64>}, {pipeline_mode = #tpu.pipeline_mode<synchronous>, transform_indices = @transform_4, window_bounds = array<i64: 1, 64>}, {pipeline_mode = #tpu.pipeline_mode<synchronous>, transform_indices = @transform_5, window_bounds = array<i64: 1, 64>}]} {
    %c0_i32 = arith.constant 0 : i32
    %0 = arith.cmpi eq, %arg0, %c0_i32 : i32
    %1 = arith.extui %0 : i1 to i32
    %c0_i32_0 = arith.constant 0 : i32
    %2 = arith.cmpi ne, %1, %c0_i32_0 : i32
    scf.if %2 {
      %cst_19 = arith.constant 0.000000e+00 : f32
      %35 = vector.broadcast %cst_19 : f32 to vector<1x32xf32>
      %c0_20 = arith.constant 0 : index
      %c0_21 = arith.constant 0 : index
      %36 = vector.load %arg7[%c0_20, %c0_21] : memref<1x32xf32, #tpu.memory_space<vmem>>, vector<1x32xf32>
      tpu.vector_store %arg7[%c0_20, %c0_21], %35 {strides = array<i32>} : memref<1x32xf32, #tpu.memory_space<vmem>>, vector<1x32xf32>,
      %cst_22 = arith.constant 0.000000e+00 : f32
      %37 = vector.broadcast %cst_22 : f32 to vector<1x1xf32>
      %c0_23 = arith.constant 0 : index
      %c0_24 = arith.constant 0 : index
      %38 = vector.load %arg8[%c0_23, %c0_24] : memref<1x1xf32, #tpu.memory_space<vmem>>, vector<1x1xf32>
      tpu.vector_store %arg8[%c0_23, %c0_24], %37 {strides = array<i32>} : memref<1x1xf32, #tpu.memory_space<vmem>>, vector<1x1xf32>,
    } else {
    }
    %c0 = arith.constant 0 : index
    %c0_1 = arith.constant 0 : index
    %3 = vector.load %arg1[%c0, %c0_1] : memref<16x32xf32, #tpu.memory_space<vmem>>, vector<16x32xf32>
    %c0_2 = arith.constant 0 : index
    %c0_3 = arith.constant 0 : index
    %4 = vector.load %arg2[%c0_2, %c0_3] : memref<1x32xf32, #tpu.memory_space<vmem>>, vector<1x32xf32>
    %5 = vector.broadcast %4 : vector<1x32xf32> to vector<16x32xf32>
    %6 = arith.mulf %3, %5 : vector<16x32xf32>
    %cst = arith.constant dense<0.000000e+00> : vector<16xf32>
    %7 = vector.multi_reduction <add>, %6, %cst [1] : vector<16x32xf32> to vector<16xf32>
    %8 = vector.shape_cast %7 : vector<16xf32> to vector<16x1xf32>
    %c0_4 = arith.constant 0 : index
    %c0_5 = arith.constant 0 : index
    %9 = memref.load %arg3[%c0_4, %c0_5] : memref<1x1xf32, #tpu.memory_space<smem>>
    %10 = vector.broadcast %9 : f32 to vector<16x1xf32>
    %11 = arith.addf %8, %10 : vector<16x1xf32>
    %12 = arith.negf %11 : vector<16x1xf32>
    %13 = math.exp %12 : vector<16x1xf32>
    %cst_6 = arith.constant 1.000000e+00 : f32
    %14 = vector.broadcast %cst_6 : f32 to vector<16x1xf32>
    %15 = arith.addf %14, %13 : vector<16x1xf32>
    %16 = arith.divf %14, %15 : vector<16x1xf32>
    %c0_7 = arith.constant 0 : index
    %c0_8 = arith.constant 0 : index
    %17 = vector.load %arg7[%c0_7, %c0_8] : memref<1x32xf32, #tpu.memory_space<vmem>>, vector<1x32xf32>
    %18 = vector.broadcast %16 : vector<16x1xf32> to vector<16x32xf32>
    %19 = arith.mulf %18, %3 : vector<16x32xf32>
    %cst_9 = arith.constant dense<0.000000e+00> : vector<32xf32>
    %20 = vector.multi_reduction <add>, %19, %cst_9 [0] : vector<16x32xf32> to vector<32xf32>
    %21 = vector.shape_cast %20 : vector<32xf32> to vector<1x32xf32>
    %22 = arith.addf %17, %21 : vector<1x32xf32>
    %c0_10 = arith.constant 0 : index
    %c0_11 = arith.constant 0 : index
    %23 = vector.load %arg7[%c0_10, %c0_11] : memref<1x32xf32, #tpu.memory_space<vmem>>, vector<1x32xf32>
    tpu.vector_store %arg7[%c0_10, %c0_11], %22 {strides = array<i32>} : memref<1x32xf32, #tpu.memory_space<vmem>>, vector<1x32xf32>,
    %c0_12 = arith.constant 0 : index
    %c0_13 = arith.constant 0 : index
    %24 = vector.load %arg8[%c0_12, %c0_13] : memref<1x1xf32, #tpu.memory_space<vmem>>, vector<1x1xf32>
    %25 = vector.shape_cast %16 : vector<16x1xf32> to vector<1x16x1xf32>
    %cst_14 = arith.constant dense<0.000000e+00> : vector<1xf32>
    %26 = vector.multi_reduction <add>, %25, %cst_14 [1, 2] : vector<1x16x1xf32> to vector<1xf32>
    %27 = vector.shape_cast %26 : vector<1xf32> to vector<1x1x1xf32>
    %28 = vector.extract %27[0, 0, 0] : f32 from vector<1x1x1xf32>
    %29 = vector.broadcast %28 : f32 to vector<1x1xf32>
    %30 = arith.addf %24, %29 : vector<1x1xf32>
    %c0_15 = arith.constant 0 : index
    %c0_16 = arith.constant 0 : index
    %31 = vector.load %arg8[%c0_15, %c0_16] : memref<1x1xf32, #tpu.memory_space<vmem>>, vector<1x1xf32>
    tpu.vector_store %arg8[%c0_15, %c0_16], %30 {strides = array<i32>} : memref<1x1xf32, #tpu.memory_space<vmem>>, vector<1x1xf32>,
    %c0_i32_17 = arith.constant 0 : i32
    %32 = arith.cmpi eq, %arg0, %c0_i32_17 : i32
    %33 = arith.extui %32 : i1 to i32
    %c0_i32_18 = arith.constant 0 : i32
    %34 = arith.cmpi ne, %33, %c0_i32_18 : i32
    scf.if %34 {
      %c0_19 = arith.constant 0 : index
      %c0_20 = arith.constant 0 : index
      %35 = vector.load %arg7[%c0_19, %c0_20] : memref<1x32xf32, #tpu.memory_space<vmem>>, vector<1x32xf32>
      %c0_21 = arith.constant 0 : index
      %c0_22 = arith.constant 0 : index
      %36 = vector.load %arg4[%c0_21, %c0_22] : memref<32x64xf32, #tpu.memory_space<vmem>>, vector<32x64xf32>
      %cst_23 = arith.constant dense<0.000000e+00> : vector<1x64xf32>
      %37 = tpu.matmul %35, %36, %cst_23 {dimension_numbers = #tpu.dot_dimension_numbers<[1], [0], [0], [1], [0, 0, 1, 1], [], []>} : vector<1x32xf32>, vector<32x64xf32>, vector<1x64xf32> -> vector<1x64xf32>
      %c0_24 = arith.constant 0 : index
      %c0_25 = arith.constant 0 : index
      %38 = vector.load %arg8[%c0_24, %c0_25] : memref<1x1xf32, #tpu.memory_space<vmem>>, vector<1x1xf32>
      %c0_26 = arith.constant 0 : index
      %c0_27 = arith.constant 0 : index
      %39 = vector.load %arg5[%c0_26, %c0_27] : memref<1x64xf32, #tpu.memory_space<vmem>>, vector<1x64xf32>
      %40 = vector.broadcast %38 : vector<1x1xf32> to vector<1x64xf32>
      %41 = arith.mulf %40, %39 : vector<1x64xf32>
      %42 = arith.addf %37, %41 : vector<1x64xf32>
      %c0_28 = arith.constant 0 : index
      %c0_29 = arith.constant 0 : index
      %43 = vector.load %arg6[%c0_28, %c0_29] : memref<1x64xf32, #tpu.memory_space<vmem>>, vector<1x64xf32>
      tpu.vector_store %arg6[%c0_28, %c0_29], %42 {strides = array<i32>} : memref<1x64xf32, #tpu.memory_space<vmem>>, vector<1x64xf32>,
    } else {
    }
    return
  }
  func.func @transform_0(%arg0: i32) -> (i32, i32) {
    %c0_i32 = arith.constant 0 : i32
    %c0_i32_0 = arith.constant 0 : i32
    return %arg0, %c0_i32 : i32, i32
  }
  func.func @transform_1(%arg0: i32) -> (i32, i32) {
    %c0_i32 = arith.constant 0 : i32
    %c0_i32_0 = arith.constant 0 : i32
    %c0_i32_1 = arith.constant 0 : i32
    return %c0_i32, %c0_i32_0 : i32, i32
  }
  func.func @transform_2(%arg0: i32) -> (i32, i32) {
    %c0_i32 = arith.constant 0 : i32
    %c0_i32_0 = arith.constant 0 : i32
    %c0_i32_1 = arith.constant 0 : i32
    return %c0_i32, %c0_i32_0 : i32, i32
  }
  func.func @transform_3(%arg0: i32) -> (i32, i32) {
    %c0_i32 = arith.constant 0 : i32
    %c0_i32_0 = arith.constant 0 : i32
    %c0_i32_1 = arith.constant 0 : i32
    return %c0_i32, %c0_i32_0 : i32, i32
  }
  func.func @transform_4(%arg0: i32) -> (i32, i32) {
    %c0_i32 = arith.constant 0 : i32
    %c0_i32_0 = arith.constant 0 : i32
    %c0_i32_1 = arith.constant 0 : i32
    return %c0_i32, %c0_i32_0 : i32, i32
  }
  func.func @transform_5(%arg0: i32) -> (i32, i32) {
    %c0_i32 = arith.constant 0 : i32
    %c0_i32_0 = arith.constant 0 : i32
    %c0_i32_1 = arith.constant 0 : i32
    return %c0_i32, %c0_i32_0 : i32, i32
  }
}

</mosaic_0001>

<bundles_post_ra>
// kernel: tpu_custom_call.1
= control target key start
LH: loop header
LB: loop body
LE: loop exit
PB: predicated region body
PF: predicated region fallthrough
CT: control target
= control target key end

     0   :  { %11 = vsyncpa [#allocation6], 0  ;;  %s448_s0 = inlined_call_operand.hbm [shape: f32[16,32], index: 0, kind: input, shape index: {}]   ;;  %s449_s1 = inlined_call_operand.vmem [shape: f32[1,32], index: 1, kind: input, shape index: {}]   ;;  %s450_s2 = inlined_call_operand.<no memory space> [shape: f32[1,1], index: 2, kind: input, shape index: {}]   ;;  %s451_s3 = inlined_call_operand.hbm [shape: f32[32,64], index: 3, kind: input, shape index: {}]   ;;  %s452_s4 = inlined_call_operand.vmem [shape: f32[1,64], index: 4, kind: input, shape index: {}]   ;;  %s453_s5 = inlined_call_operand.hbm [shape: f32[1,64], index: 5, kind: output, shape index: {}]  }
   0x1   :  { %12 = vsyncpa [#allocation9], 0 }
   0x2   :  { %13 = vsyncpa [#allocation7], 0  ;;  %s355_s18 = smov [#allocation5]   ;;  %s283_s22 = scalar_lea.hbm %s448_s0, 256 }
   0x3   :  { %s19_s19 = sshll.u32 %s355_s18, 4  ;;  %p284_p0 = scmp.ne.s32.totalorder %s448_s0, %s283_s22  ;;  %s20_s19 = int_to_ptr.vmem [resolvable:$true] %s19_s19 }
   0x4   :  { %p287_p1 = scmp.lt.u32.totalorder %s283_s22, %s448_s0 }
   0x6   :  { %p289_p2 = pnand %p287_p1, %p284_p0 }
   0x8   :  { %292 = shalt.err (!%p289_p2)
}
   0x9   :  { %s293_s27 = scalar_lea.vmem %s20_s19, 256  ;;  %p298_p4 = scmp.lt.s32.totalorder %s20_s19, %s20_s19 }
   0xa   :  { %p294_p3 = scmp.ne.s32.totalorder %s20_s19, %s293_s27  ;;  %p299_p5 = scmp.lt.s32.totalorder %s293_s27, %s293_s27 }
   0xc   :  { %p300_p6 = por %p299_p5, %p298_p4 }
   0xe   :  { %p301_p7 = pnand %p300_p6, %p294_p3 }
  0x10   :  { %304 = shalt.err (!%p301_p7)
}
  0x11   :  { %s356_s28 = smov 128   ;;  %s357_s29 = smov 8  }
  0x12   :  { %25 = dma.hbm_to_vmem [thread:$0]  %s448_s0, 256, %s20_s19, [#allocation6], %s356_s28, %s356_s28, %s357_s29  }
  0x13   :  { %s358_s7 = smov [#allocation8]   ;;  %s305_s11 = scalar_lea.hbm %s451_s3, 512 }
  0x14   :  { %s35_s8 = sshll.u32 %s358_s7, 4  ;;  %p306_p8 = scmp.ne.s32.totalorder %s451_s3, %s305_s11  ;;  %s36_s8 = int_to_ptr.vmem [resolvable:$true] %s35_s8 }
  0x15   :  { %p309_p9 = scmp.lt.u32.totalorder %s305_s11, %s451_s3 }
  0x17   :  { %p311_p10 = pnand %p309_p9, %p306_p8 }
  0x19   :  { %314 = shalt.err (!%p311_p10)
}
  0x1a   :  { %s315_s16 = scalar_lea.vmem %s36_s8, 512  ;;  %p320_p12 = scmp.lt.s32.totalorder %s36_s8, %s36_s8 }
  0x1b   :  { %p316_p11 = scmp.ne.s32.totalorder %s36_s8, %s315_s16  ;;  %p321_p13 = scmp.lt.s32.totalorder %s315_s16, %s315_s16 }
  0x1d   :  { %p322_p0 = por %p321_p13, %p320_p12 }
  0x1f   :  { %p323_p1 = pnand %p322_p0, %p316_p11 }
  0x21   :  { %326 = shalt.err (!%p323_p1)
}
  0x22   :  { %41 = dma.hbm_to_vmem [thread:$0]  %s451_s3, 512, %s36_s8, [#allocation9], %s356_s28, %s356_s28, %s357_s29  }
  0x23   :  { %349 = dma.done.wait [#allocation6], 256  }
  0x24   :  { %350 = vsyncadd [#allocation6], 4294967040 }
  0x25   :  { %351 = dma.done.wait [#allocation9], 512  }
  0x26   :  { %352 = vsyncadd [#allocation9], 4294966784  ;;  %v58_v0 = vld [vmem:[#allocation5] sm:$0xff]  ;;  %v236_v1 = vld [vmem:[%s449_s1] ss:$0 sm:$0xff]  ;;  %vm69_vm0 = vcmask 261120   ;;  %v77_v15 = vstv %s450_s2  ;;  %v140_v59 = vlaneseq }
  0x27   :  { %v59_v2 = vld [vmem:[#allocation5 + $0x8] sm:$0xff]  ;;  %v67_v3 = vmul.f32 %v236_v1, %v58_v0  ;;  %vm54_vm1 = vcmask 253952   ;;  %v129_v7 = vld [vmem:[#allocation8] sm:$0xff]  ;;  %v130_v8 = vld [vmem:[#allocation8 + $0x8] sm:$0xff]  ;;  %v359_v10 = vmov 0.0   ;;  %vm56_vm2 = vcmask 0  }
  0x28   :  { %v68_v4 = vmul.f32 %v236_v1, %v59_v2  ;;  %v131_v9 = vld [vmem:[#allocation8 + $0x10] sm:$0xff]  ;;  %55 = vst.msk [vmem:[#allocation2] sm:$0x1] %vm54_vm1, %v359_v10  ;;  %v360_v11 = vmov 0.0|0.0   ;;  %v257_v12 = vpack.c.bf16 %v130_v8, %v129_v7  ;;  %v132_v13 = vld [vmem:[#allocation8 + $0x18] sm:$0xff]  ;;  %vm361_vm3 = vmmov 0  }
  0x29   :  { %v70_v5 = vsel %vm69_vm0, %v67_v3, 0.0  ;;  %256 = vmatprep.subr.bf16.mxu0 %v360_v11  ;;  %57 = vst.msk [vmem:[#allocation3] sm:$0x1] %vm56_vm2, %v359_v10  ;;  %v260_v14 = vpack.c.bf16 %v132_v13, %v131_v9  ;;  %253 = vmatprep.mubr.msk.f32.mxu0 %vm361_vm3, %v359_v10  ;;  %vm108_vm4 = vcmask 7168   ;;  %v362_v45 = vmov 0   ;;  %s363_s22 = smov [#allocation10]  }
  0x2a   :  { %71 = vadd.xlane.f32.xlu0 %v70_v5  ;;  %v73_v6 = vsel %vm69_vm0, %v68_v4, 0.0  ;;  %258 = vmatpush3.bf16.msra.mxu0 %v257_v12  ;;  %v141_v60 = vshrl.u32 %v140_v59, 7  ;;  %v134_v62 = vld [vmem:[%s452_s4] sm:$0x1]  ;;  %s226_s23 = sshll.u32 %s363_s22, 4  ;;  %vm218_vm5 = vcmask 516096   ;;  %s227_s23 = int_to_ptr.vmem [resolvable:$true] %s226_s23 }
  0x2b   :  { %259 = vmatprep.subr.bf16.mxu0 %v360_v11  ;;  %273 = vset.pattern.permute.xlu1 %v362_v45  ;;  %s327_s24 = scalar_lea.vmem %s227_s23, 16  ;;  %s331_s25 = scalar_lea.vmem %s227_s23, 32 }
  0x2c   :  { %274 = vset.pattern.permute.xlu0 %v362_v45  ;;  %v142_v61 = vsub.s32 0, %v141_v60  ;;  %p328_p2 = scmp.ne.s32.totalorder %s227_s23, %s327_s24  ;;  %p332_p3 = scmp.lt.s32.totalorder %s227_s23, %s227_s23 }
  0x2d   :  { %p333_p4 = scmp.lt.s32.totalorder %s331_s25, %s327_s24 }
  0x2e   :  { %74 = vadd.xlane.f32.xlu0 %v73_v6  ;;  %261 = vmatpush3.bf16.msra.mxu0 %v260_v14 }
  0x2f   :  { %v92_v41 = vld [vmem:[#allocation2] sm:$0x1]  ;;  %p334_p5 = por %p333_p4, %p332_p3 }
  0x30   :  { %v107_v53 = vld [vmem:[#allocation3] sm:$0x1] }
  0x31   :  { %p335_p6 = pnand %p334_p5, %p328_p2 }
  0xb7   :  { %v72_v16 = vpop.xlane.xlu0 %71 }
  0xb8   :  { %v78_v17 = vadd.f32 %v77_v15, %v72_v16 }
  0xba   :  { %v237_v18 = vmul.f32 -1.442695, %v78_v17 }
  0xbb   :  { %v75_v19 = vpop.xlane.xlu0 %74 }
  0xbc   :  { %275 = vpow2.f32 %v237_v18  ;;  %v79_v20 = vadd.f32 %v77_v15, %v75_v19 }
  0xbe   :  { %v238_v21 = vmul.f32 -1.442695, %v79_v20 }
  0xc0   :  { %277 = vpow2.f32 %v238_v21 }
  0xc6   :  { %v276_v22 = vpop.eup %275 }
  0xc7   :  { %v86_v23 = vadd.f32 1.0, %v276_v22 }
  0xc9   :  { %279 = vrcp.f32 %v86_v23 }
  0xca   :  { %v278_v24 = vpop.eup %277 }
  0xcb   :  { %v87_v25 = vadd.f32 1.0, %v278_v24 }
  0xcd   :  { %281 = vrcp.f32 %v87_v25 }
  0xd3   :  { %v280_v26 = vpop.eup %279 }
  0xd4   :  { %v93_v27 = vmul.f32 %v280_v26, %v58_v0  ;;  %v109_v30 = vsel %vm108_vm4, %v280_v26, 0.0 }
  0xd6   :  { %v95_v33 = vsel %vm69_vm0, %v93_v27, 0.0 }
  0xd7   :  { %v282_v28 = vpop.eup %281 }
  0xd8   :  { %v94_v29 = vmul.f32 %v282_v28, %v59_v2  ;;  %v110_v31 = vsel %vm108_vm4, %v282_v28, 0.0 }
  0xd9   :  { %v111_v32 = vadd.f32 %v110_v31, %v109_v30 }
  0xda   :  { %v96_v34 = vsel %vm69_vm0, %v94_v29, 0.0 }
  0xdb   :  { %v97_v35 = vadd.f32 %v96_v34, %v95_v33  ;;  %112 = vadd.xlane.f32.xlu1 %v111_v32 }
  0xdd   :  { %v98_v36 = vrot.slane %v97_v35, 4 }
  0xdf   :  { %v99_v37 = vadd.f32 %v98_v36, %v97_v35 }
  0xe1   :  { %v100_v38 = vrot.slane %v99_v37, 2 }
  0xe3   :  { %v101_v39 = vadd.f32 %v100_v38, %v99_v37 }
  0xe5   :  { %v102_v40 = vrot.slane %v101_v39, 1 }
  0xe7   :  { %v103_v42 = vadd.f32 %v102_v40, %v101_v39 }
  0xe9   :  { %v104_v43 = vadd.f32 %v103_v42, %v92_v41 }
  0xeb   :  { %106 = vst.msk [vmem:[#allocation2] sm:$0x1] %vm54_vm1, %v104_v43 }
  0xf2   :  { %v128_v44 = vld [vmem:[#allocation2] sm:$0x1] }
  0xf3   :  { %254 = vmatmul.mubr.msk.f32.vlgmr.msra.gmra.mrb[0].mxu0 %vm69_vm0, %v128_v44 }
 0x168   :  { %v113_v46 = vpop.xlane.xlu1 %112 }
 0x169   :  { %v114_v47 = vrot.slane %v113_v46, 4 }
 0x16b   :  { %v115_v48 = vadd.f32 %v114_v47, %v113_v46 }
 0x16d   :  { %v116_v49 = vrot.slane %v115_v48, 2 }
 0x16f   :  { %v117_v50 = vadd.f32 %v116_v49, %v115_v48 }
 0x171   :  { %v118_v51 = vrot.slane %v117_v50, 1 }
 0x173   :  { %v119_v52 = vadd.f32 %v118_v51, %v117_v50 }
 0x175   :  { %262 = vpush %v119_v52 }
 0x1a6   :  { %s263_s2 = spop %262 }
 0x1a7   :  { %v121_v54 = vstv %s263_s2 }
 0x1a8   :  { %v122_v55 = vadd.f32 %v121_v54, %v107_v53 }
 0x1aa   :  { %124 = vst.msk [vmem:[#allocation3] sm:$0x1] %vm56_vm2, %v122_v55 }
 0x1b1   :  { %v133_v56 = vld [vmem:[#allocation3] sm:$0x1] }
 0x1b2   :  { %137 = vperm.xlu1 %273, %v133_v56  }
 0x1c6   :  { %v214_v57 = vpop.f32.mrb[0].mxu0 }
 0x1c7   :  { %v255_v58 = vpop.f32.mrb[1].mxu0 }
 0x231   :  { %v138_v63 = vpop.permute.xlu1 %137 }
 0x232   :  { %v143_v0 = vrot.slane %v138_v63, %v142_v61 }
 0x234   :  { %v144_v1 = vmul.f32 %v143_v0, %v134_v62 }
 0x236   :  { %v215_v2 = vadd.f32 %v214_v57, %v144_v1 }
 0x238   :  { %219 = vst.msk [vmem:[#allocation10] sm:$0x1] %vm218_vm5, %v215_v2 }
 0x239   :  { %338 = shalt.err (!%p335_p6)
}
 0x23a   :  { %s339_s4 = scalar_lea.hbm %s453_s5, 16 }
 0x23b   :  { %p340_p7 = scmp.ne.s32.totalorder %s453_s5, %s339_s4  ;;  %p343_p8 = scmp.lt.u32.totalorder %s339_s4, %s453_s5 }
 0x23d   :  { %p345_p9 = pnand %p343_p8, %p340_p7 }
 0x23f   :  { %348 = shalt.err (!%p345_p9)
}
 0x240   :  { %229 = dma.vmem_to_hbm [thread:$0]  %s227_s23, 16, %s453_s5, [#allocation7]  }
 0x241   :  { %353 = dma.done.wait [#allocation7], 16  }
 0x242   :  { %354 = vsyncadd [#allocation7], 4294967280 }
 0x243   :  { %233 = vsyncpa [#allocation6], 1 }
 0x244   :  { %234 = vsyncpa [#allocation9], 1 }
 0x245   :  { %235 = vsyncpa [#allocation7], 1 }

</bundles_post_ra>
